<compile_context>
chip_gen: v7x
topology: tpu7x:2x2x1
jax: 0.10.0
libtpu: 0.0.40
codegen_flags: <defaults>
</compile_context>

<pallas_src>
import functools

import jax
import jax.numpy as jnp
from jax.experimental import pallas as pl
from jax.experimental.pallas import tpu as pltpu


def _kd_loss_kernel(t_ref, s_ref, lab_ref, out_ref, *,
                    inv_temperature, alpha, kl_scale, batch, tile_rows):
    """Fused per-row CE + tempered-KL losses for one (TB, C) batch tile.

    t_ref, s_ref : (TB, C) teacher / student logits (any float dtype)
    lab_ref      : (TB, 1) int32 class indices
    out_ref      : (TB, 1) f32 per-row combined loss (0 for padded rows)
    """
    t = t_ref[...].astype(jnp.float32)
    s = s_ref[...].astype(jnp.float32)
    lab = lab_ref[...]
    TB, C = s.shape

    # Rows beyond the true batch size (padding in the last tile) contribute 0.
    row0 = pl.program_id(0) * tile_rows
    row_ids = jax.lax.broadcasted_iota(jnp.int32, (TB, 1), 0) + row0
    valid = (row_ids < batch).astype(jnp.float32)                      # (TB,1)

    # ---- Cross-entropy(student, labels), per row: lse(s) - s[label] ----
    s_max = jnp.max(s, axis=-1, keepdims=True)                         # (TB,1)
    lse = jnp.log(jnp.sum(jnp.exp(s - s_max), axis=-1, keepdims=True)) + s_max
    cls = jax.lax.broadcasted_iota(jnp.int32, (TB, C), 1)
    picked = jnp.sum(jnp.where(cls == lab, s, 0.0), axis=-1, keepdims=True)
    ce_row = lse - picked                                              # (TB,1)

    # ---- KL(softmax(t/T) || softmax(s/T)), per row ----
    ts = t * inv_temperature            # multiply, not divide (VPU not EUP)
    ss = s * inv_temperature

    t_max = jnp.max(ts, axis=-1, keepdims=True)
    t_exp = jnp.exp(ts - t_max)
    t_sum = jnp.sum(t_exp, axis=-1, keepdims=True)
    p = t_exp * (1.0 / t_sum)           # exact reciprocal-multiply, no B*C divides
    log_p = (ts - t_max) - jnp.log(t_sum)

    ss_max = s_max * inv_temperature    # reuse student max (T > 0) -> one less XLU pass
    log_q = (ss - ss_max) - jnp.log(
        jnp.sum(jnp.exp(ss - ss_max), axis=-1, keepdims=True))

    kl_row = jnp.sum(p * (log_p - log_q), axis=-1, keepdims=True)      # (TB,1)

    # ---- Fused per-row total, masked for batch padding ----
    out_ref[...] = (alpha * ce_row + kl_scale * kl_row) * valid


def _pick_tile_rows(batch, num_classes, in_bytes):
    """Choose batch-tile rows from a conservative per-generation VMEM budget."""
    # Per tile row: 2 inputs x 2 pipeline buffers x C x in_bytes
    # plus ~8 live (row, C) f32 temporaries inside the body.
    per_row = num_classes * (4 * in_bytes + 8 * 4) + 64
    budget = 16 * 1024 * 1024          # fits v5e 16 MiB / v7x 32 MiB scoped defaults
    tb = max(8, min(512, budget // per_row))
    tb -= tb % 8                       # second-minor block dim: multiple of 8
    b8 = ((batch + 7) // 8) * 8        # don't pad a small batch to a huge tile
    return max(8, min(tb, b8))


def knowledge_distillation_loss(teacher_outputs, student_logits, labels,
                                *, temperature, alpha):
    B, C = student_logits.shape
    in_bytes = jnp.dtype(student_logits.dtype).itemsize
    tb = _pick_tile_rows(B, C, in_bytes)
    b_pad = ((B + tb - 1) // tb) * tb
    grid = b_pad // tb

    labels2d = labels.astype(jnp.int32).reshape(B, 1)
    if b_pad != B:
        pad = ((0, b_pad - B), (0, 0))
        teacher_outputs = jnp.pad(teacher_outputs, pad)
        student_logits = jnp.pad(student_logits, pad)
        labels2d = jnp.pad(labels2d, pad)

    temperature = float(temperature)
    alpha = float(alpha)
    kernel = functools.partial(
        _kd_loss_kernel,
        inv_temperature=1.0 / temperature,
        alpha=alpha,
        kl_scale=(1.0 - alpha) * temperature * temperature,
        batch=B,
        tile_rows=tb,
    )

    row_losses = pl.pallas_call(
        kernel,
        out_shape=jax.ShapeDtypeStruct((b_pad, 1), jnp.float32),
        grid=(grid,),
        in_specs=[
            pl.BlockSpec((tb, C), lambda i: (i, 0)),   # teacher logits tile
            pl.BlockSpec((tb, C), lambda i: (i, 0)),   # student logits tile
            pl.BlockSpec((tb, 1), lambda i: (i, 0)),   # labels tile
        ],
        out_specs=pl.BlockSpec((tb, 1), lambda i: (i, 0)),
        compiler_params=pltpu.CompilerParams(
            dimension_semantics=("parallel",),         # disjoint tiles -> megacore OK
            vmem_limit_bytes=32 * 1024 * 1024,
        ),
    )(teacher_outputs, student_logits, labels2d)

    # Tiny final reduction in plain JAX: both CE 'mean' and KLDiv 'batchmean'
    # divide by the true batch size.
    return jnp.sum(row_losses) / B


if __name__ == "__main__":
    key = jax.random.PRNGKey(0)
    k_t, k_s, k_l = jax.random.split(key, 3)

    B, C = 10, 32            # B=10 also exercises the batch-padding mask path
    temperature = 2.0
    alpha = 0.5

    teacher = jax.random.normal(k_t, (B, C), dtype=jnp.float32)
    student = jax.random.normal(k_s, (B, C), dtype=jnp.float32)
    labels = jax.random.randint(k_l, (B,), 0, C, dtype=jnp.int32)

    loss = knowledge_distillation_loss(
        teacher, student, labels, temperature=temperature, alpha=alpha
    )
    jax.block_until_ready(loss)

    # Pure-JAX reference (same math as the PyTorch module).
    lse = jax.nn.logsumexp(student, axis=-1)
    ce_ref = jnp.mean(lse - student[jnp.arange(B), labels])
    p = jax.nn.softmax(teacher / temperature, axis=-1)
    log_q = jax.nn.log_softmax(student / temperature, axis=-1)
    kl_ref = jnp.sum(p * (jnp.log(p) - log_q)) / B
    ref = ce_ref * alpha + kl_ref * (1 - alpha) * temperature * temperature
    assert jnp.allclose(loss, ref, rtol=1e-5, atol=1e-5), (loss, ref)

    print("KERNEL_OK")
</pallas_src>

<mosaic_0001>
module attributes {stable_mosaic.version = 11 : i64} {
  func.func @_kd_loss_kernel(%arg0: i32, %arg1: memref<16x32xf32, #tpu.memory_space<vmem>>, %arg2: memref<16x32xf32, #tpu.memory_space<vmem>>, %arg3: memref<16x1xi32, #tpu.memory_space<vmem>>, %arg4: memref<16x1xf32, #tpu.memory_space<vmem>>) attributes {dimension_semantics = [#tpu.dimension_semantics<parallel>], iteration_bounds = array<i64: 1>, scalar_prefetch = 0 : i64, scratch_operands = 0 : i64, tpu.core_type = #tpu.core_type<tc>, window_params = [{transform_indices = @transform_0, window_bounds = array<i64: 16, 32>}, {transform_indices = @transform_1, window_bounds = array<i64: 16, 32>}, {transform_indices = @transform_2, window_bounds = array<i64: 16, 1>}, {transform_indices = @transform_3, window_bounds = array<i64: 16, 1>}]} {
    %c0 = arith.constant 0 : index
    %c0_0 = arith.constant 0 : index
    %0 = vector.load %arg1[%c0, %c0_0] : memref<16x32xf32, #tpu.memory_space<vmem>>, vector<16x32xf32>
    %c0_1 = arith.constant 0 : index
    %c0_2 = arith.constant 0 : index
    %1 = vector.load %arg2[%c0_1, %c0_2] : memref<16x32xf32, #tpu.memory_space<vmem>>, vector<16x32xf32>
    %c0_3 = arith.constant 0 : index
    %c0_4 = arith.constant 0 : index
    %2 = vector.load %arg3[%c0_3, %c0_4] : memref<16x1xi32, #tpu.memory_space<vmem>>, vector<16x1xi32>
    %c16_i32 = arith.constant 16 : i32
    %3 = arith.muli %arg0, %c16_i32 : i32
    %4 = tpu.iota {dimensions = array<i32: 0>} : vector<16x1xi32>
    %5 = vector.broadcast %3 : i32 to vector<16x1xi32>
    %6 = arith.addi %4, %5 : vector<16x1xi32>
    %c10_i32 = arith.constant 10 : i32
    %7 = vector.broadcast %c10_i32 : i32 to vector<16x1xi32>
    %8 = arith.cmpi slt, %6, %7 : vector<16x1xi32>
    %9 = arith.extui %8 : vector<16x1xi1> to vector<16x1xi32>
    %10 = arith.sitofp %9 : vector<16x1xi32> to vector<16x1xf32>
    %cst = arith.constant dense<0xFF800000> : vector<16xf32>
    %11 = vector.multi_reduction <maximumf>, %1, %cst [1] : vector<16x32xf32> to vector<16xf32>
    %12 = vector.shape_cast %11 : vector<16xf32> to vector<16x1xf32>
    %13 = vector.broadcast %12 : vector<16x1xf32> to vector<16x32xf32>
    %14 = arith.subf %1, %13 : vector<16x32xf32>
    %15 = math.exp %14 : vector<16x32xf32>
    %cst_5 = arith.constant dense<0.000000e+00> : vector<16xf32>
    %16 = vector.multi_reduction <add>, %15, %cst_5 [1] : vector<16x32xf32> to vector<16xf32>
    %17 = vector.shape_cast %16 : vector<16xf32> to vector<16x1xf32>
    %18 = math.log %17 : vector<16x1xf32>
    %19 = arith.addf %18, %12 : vector<16x1xf32>
    %20 = tpu.iota {dimensions = array<i32: 1>} : vector<16x32xi32>
    %21 = vector.broadcast %2 : vector<16x1xi32> to vector<16x32xi32>
    %22 = arith.cmpi eq, %20, %21 : vector<16x32xi32>
    %cst_6 = arith.constant 0.000000e+00 : f32
    %23 = vector.broadcast %cst_6 : f32 to vector<16x32xf32>
    %24 = arith.select %22, %1, %23 : vector<16x32xi1>, vector<16x32xf32>
    %cst_7 = arith.constant dense<0.000000e+00> : vector<16xf32>
    %25 = vector.multi_reduction <add>, %24, %cst_7 [1] : vector<16x32xf32> to vector<16xf32>
    %26 = vector.shape_cast %25 : vector<16xf32> to vector<16x1xf32>
    %27 = arith.subf %19, %26 : vector<16x1xf32>
    %cst_8 = arith.constant 5.000000e-01 : f32
    %28 = vector.broadcast %cst_8 : f32 to vector<16x32xf32>
    %29 = arith.mulf %0, %28 : vector<16x32xf32>
    %cst_9 = arith.constant 5.000000e-01 : f32
    %30 = vector.broadcast %cst_9 : f32 to vector<16x32xf32>
    %31 = arith.mulf %1, %30 : vector<16x32xf32>
    %cst_10 = arith.constant dense<0xFF800000> : vector<16xf32>
    %32 = vector.multi_reduction <maximumf>, %29, %cst_10 [1] : vector<16x32xf32> to vector<16xf32>
    %33 = vector.shape_cast %32 : vector<16xf32> to vector<16x1xf32>
    %34 = vector.broadcast %33 : vector<16x1xf32> to vector<16x32xf32>
    %35 = arith.subf %29, %34 : vector<16x32xf32>
    %36 = math.exp %35 : vector<16x32xf32>
    %cst_11 = arith.constant dense<0.000000e+00> : vector<16xf32>
    %37 = vector.multi_reduction <add>, %36, %cst_11 [1] : vector<16x32xf32> to vector<16xf32>
    %38 = vector.shape_cast %37 : vector<16xf32> to vector<16x1xf32>
    %cst_12 = arith.constant 1.000000e+00 : f32
    %39 = vector.broadcast %cst_12 : f32 to vector<16x1xf32>
    %40 = arith.divf %39, %38 : vector<16x1xf32>
    %41 = vector.broadcast %40 : vector<16x1xf32> to vector<16x32xf32>
    %42 = arith.mulf %36, %41 : vector<16x32xf32>
    %43 = vector.broadcast %33 : vector<16x1xf32> to vector<16x32xf32>
    %44 = arith.subf %29, %43 : vector<16x32xf32>
    %45 = math.log %38 : vector<16x1xf32>
    %46 = vector.broadcast %45 : vector<16x1xf32> to vector<16x32xf32>
    %47 = arith.subf %44, %46 : vector<16x32xf32>
    %cst_13 = arith.constant 5.000000e-01 : f32
    %48 = vector.broadcast %cst_13 : f32 to vector<16x1xf32>
    %49 = arith.mulf %12, %48 : vector<16x1xf32>
    %50 = vector.broadcast %49 : vector<16x1xf32> to vector<16x32xf32>
    %51 = arith.subf %31, %50 : vector<16x32xf32>
    %52 = vector.broadcast %49 : vector<16x1xf32> to vector<16x32xf32>
    %53 = arith.subf %31, %52 : vector<16x32xf32>
    %54 = math.exp %53 : vector<16x32xf32>
    %cst_14 = arith.constant dense<0.000000e+00> : vector<16xf32>
    %55 = vector.multi_reduction <add>, %54, %cst_14 [1] : vector<16x32xf32> to vector<16xf32>
    %56 = vector.shape_cast %55 : vector<16xf32> to vector<16x1xf32>
    %57 = math.log %56 : vector<16x1xf32>
    %58 = vector.broadcast %57 : vector<16x1xf32> to vector<16x32xf32>
    %59 = arith.subf %51, %58 : vector<16x32xf32>
    %60 = arith.subf %47, %59 : vector<16x32xf32>
    %61 = arith.mulf %42, %60 : vector<16x32xf32>
    %cst_15 = arith.constant dense<0.000000e+00> : vector<16xf32>
    %62 = vector.multi_reduction <add>, %61, %cst_15 [1] : vector<16x32xf32> to vector<16xf32>
    %63 = vector.shape_cast %62 : vector<16xf32> to vector<16x1xf32>
    %cst_16 = arith.constant 5.000000e-01 : f32
    %64 = vector.broadcast %cst_16 : f32 to vector<16x1xf32>
    %65 = arith.mulf %64, %27 : vector<16x1xf32>
    %cst_17 = arith.constant 2.000000e+00 : f32
    %66 = vector.broadcast %cst_17 : f32 to vector<16x1xf32>
    %67 = arith.mulf %66, %63 : vector<16x1xf32>
    %68 = arith.addf %65, %67 : vector<16x1xf32>
    %69 = arith.mulf %68, %10 : vector<16x1xf32>
    %c0_18 = arith.constant 0 : index
    %c0_19 = arith.constant 0 : index
    %70 = vector.load %arg4[%c0_18, %c0_19] : memref<16x1xf32, #tpu.memory_space<vmem>>, vector<16x1xf32>
    tpu.vector_store %arg4[%c0_18, %c0_19], %69 {strides = array<i32>} : memref<16x1xf32, #tpu.memory_space<vmem>>, vector<16x1xf32>,
    return
  }
  func.func @transform_0(%arg0: i32) -> (i32, i32) {
    %c0_i32 = arith.constant 0 : i32
    %c0_i32_0 = arith.constant 0 : i32
    return %arg0, %c0_i32 : i32, i32
  }
  func.func @transform_1(%arg0: i32) -> (i32, i32) {
    %c0_i32 = arith.constant 0 : i32
    %c0_i32_0 = arith.constant 0 : i32
    return %arg0, %c0_i32 : i32, i32
  }
  func.func @transform_2(%arg0: i32) -> (i32, i32) {
    %c0_i32 = arith.constant 0 : i32
    %c0_i32_0 = arith.constant 0 : i32
    return %arg0, %c0_i32 : i32, i32
  }
  func.func @transform_3(%arg0: i32) -> (i32, i32) {
    %c0_i32 = arith.constant 0 : i32
    %c0_i32_0 = arith.constant 0 : i32
    return %arg0, %c0_i32 : i32, i32
  }
}

</mosaic_0001>

<bundles_post_ra>
// kernel: tpu_custom_call.1
= control target key start
LH: loop header
LB: loop body
LE: loop exit
PB: predicated region body
PF: predicated region fallthrough
CT: control target
= control target key end

     0   :  { %8 = vsyncpa [#allocation3], 0  ;;  %s232_s12 = smov [#allocation2]   ;;  %s339_s0 = inlined_call_operand.vmem [shape: f32[16,32], index: 0, kind: input, shape index: {}]   ;;  %s340_s1 = inlined_call_operand.hbm [shape: f32[16,32], index: 1, kind: input, shape index: {}]   ;;  %s341_s2 = inlined_call_operand.vmem [shape: s32[16,1], index: 2, kind: input, shape index: {}]   ;;  %s342_s3 = inlined_call_operand.vmem [shape: f32[16,1], index: 3, kind: output, shape index: {}]  }
   0x1   :  { %s16_s13 = sshll.u32 %s232_s12, 4  ;;  %s208_s16 = scalar_lea.hbm %s340_s1, 256  ;;  %s17_s13 = int_to_ptr.vmem [resolvable:$true] %s16_s13 }
   0x2   :  { %p209_p0 = scmp.ne.s32.totalorder %s340_s1, %s208_s16  ;;  %p212_p1 = scmp.lt.u32.totalorder %s208_s16, %s340_s1 }
   0x4   :  { %p214_p2 = pnand %p212_p1, %p209_p0 }
   0x6   :  { %217 = shalt.err (!%p214_p2)
}
   0x7   :  { %s218_s21 = scalar_lea.vmem %s17_s13, 256  ;;  %p223_p4 = scmp.lt.s32.totalorder %s17_s13, %s17_s13 }
   0x8   :  { %p219_p3 = scmp.ne.s32.totalorder %s17_s13, %s218_s21  ;;  %p224_p5 = scmp.lt.s32.totalorder %s218_s21, %s218_s21 }
   0xa   :  { %p225_p6 = por %p224_p5, %p223_p4 }
   0xc   :  { %p226_p7 = pnand %p225_p6, %p219_p3 }
   0xe   :  { %229 = shalt.err (!%p226_p7)
}
   0xf   :  { %s233_s22 = smov 128   ;;  %s234_s23 = smov 8  }
  0x10   :  { %22 = dma.hbm_to_vmem [thread:$0]  %s340_s1, 256, %s17_s13, [#allocation3], %s233_s22, %s233_s22, %s234_s23  }
  0x11   :  { %230 = dma.done.wait [#allocation3], 256  }
  0x12   :  { %231 = vsyncadd [#allocation3], 4294967040  ;;  %vm47_vm0 = vcmask 261120   ;;  %v269_v0 = vld [vmem:[#allocation2 + $0x8] sm:$0xff]  ;;  %v274_v2 = vld [vmem:[#allocation2] sm:$0xff]  ;;  %v235_v10 = vmov 0   ;;  %v35_v49 = vlaneseq }
  0x13   :  { %v29_v1 = vld [vmem:[%s339_s0 + $0x8] sm:$0xff]  ;;  %v51_v3 = vsel %vm47_vm0, %v269_v0, -inf  ;;  %v28_v5 = vld [vmem:[%s339_s0] sm:$0xff]  ;;  %v48_v8 = vsel %vm47_vm0, %v274_v2, -inf  ;;  %179 = vset.pattern.permute.xlu1 %v235_v10  ;;  %178 = vset.pattern.permute.xlu0 %v235_v10  ;;  %v95_v11 = vmul.f32 0.5, %v269_v0  ;;  %v94_v17 = vmul.f32 0.5, %v274_v2 }
  0x14   :  { %v93_v4 = vmul.f32 0.5, %v29_v1  ;;  %52 = vmax.xlane.f32.xlu0 %v51_v3  ;;  %v92_v6 = vmul.f32 0.5, %v28_v5  ;;  %v32_v35 = vld [vmem:[%s341_s2] sm:$0xff]  ;;  %v33_v36 = vld [vmem:[%s341_s2 + $0x8] sm:$0xff]  ;;  %v73_v51 = vand.u32 127, %v35_v49  ;;  %vm164_vm4 = vcmask 7168  }
  0x16   :  { %v99_v7 = vsel %vm47_vm0, %v93_v4, -inf  ;;  %v96_v9 = vsel %vm47_vm0, %v92_v6, -inf }
  0x17   :  { %100 = vmax.xlane.f32.xlu1 %v99_v7 }
  0x18   :  { %49 = vmax.xlane.f32.xlu0 %v48_v8 }
  0x1b   :  { %97 = vmax.xlane.f32.xlu1 %v96_v9 }
  0xa1   :  { %v286_v12 = vpop.xlane.xlu0 %52 }
  0xa2   :  { %v127_v13 = vmul.f32 0.5, %v286_v12  ;;  %v55_v37 = vsub.f32 %v269_v0, %v286_v12 }
  0xa4   :  { %v101_v14 = vpop.xlane.xlu1 %100  ;;  %v289_v15 = vsub.f32 %v95_v11, %v127_v13  ;;  %v58_v39 = vmul.f32 1.442695, %v55_v37 }
  0xa5   :  { %v291_v16 = vsub.f32 %v93_v4, %v101_v14  ;;  %v294_v18 = vpop.xlane.xlu0 %49 }
  0xa6   :  { %v132_v19 = vmul.f32 1.442695, %v289_v15  ;;  %v126_v21 = vmul.f32 0.5, %v294_v18  ;;  %v54_v38 = vsub.f32 %v274_v2, %v294_v18 }
  0xa7   :  { %v106_v20 = vmul.f32 1.442695, %v291_v16 }
  0xa8   :  { %v98_v22 = vpop.xlane.xlu1 %97  ;;  %180 = vpow2.f32 %v132_v19  ;;  %v301_v24 = vsub.f32 %v94_v17, %v126_v21  ;;  %v56_v40 = vmul.f32 1.442695, %v54_v38 }
  0xa9   :  { %v299_v23 = vsub.f32 %v92_v6, %v98_v22  ;;  %182 = vpow2.f32 %v106_v20  ;;  %v36_v20 = vshrl.u32 %v35_v49, 7 }
  0xaa   :  { %v130_v26 = vmul.f32 1.442695, %v301_v24 }
  0xab   :  { %v104_v25 = vmul.f32 1.442695, %v299_v23 }
  0xad   :  { %184 = vpow2.f32 %v104_v25 }
  0xae   :  { %186 = vpow2.f32 %v130_v26  ;;  %v37_v26 = vadd.s32 8, %v36_v20 }
  0xaf   :  { %188 = vpow2.f32 %v58_v39 }
  0xb0   :  { %190 = vpow2.f32 %v56_v40  ;;  %vm42_vm3 = vcmp.lt.s32.totalorder %v37_v26, 10 }
  0xb2   :  { %v181_v27 = vpop.eup %180 }
  0xb3   :  { %v183_v28 = vpop.eup %182  ;;  %v137_v29 = vsel %vm47_vm0, %v181_v27, 0.0 }
  0xb4   :  { %v111_v30 = vsel %vm47_vm0, %v183_v28, 0.0  ;;  %138 = vadd.xlane.f32.xlu1 %v137_v29 }
  0xb5   :  { %112 = vadd.xlane.f32.xlu0 %v111_v30 }
  0xb7   :  { %v185_v31 = vpop.eup %184 }
  0xb8   :  { %v187_v32 = vpop.eup %186  ;;  %v108_v33 = vsel %vm47_vm0, %v185_v31, 0.0 }
  0xb9   :  { %v134_v34 = vsel %vm47_vm0, %v187_v32, 0.0  ;;  %109 = vadd.xlane.f32.xlu0 %v108_v33  ;;  %v189_v41 = vpop.eup %188 }
  0xba   :  { %135 = vadd.xlane.f32.xlu1 %v134_v34  ;;  %v191_v42 = vpop.eup %190  ;;  %v63_v43 = vsel %vm47_vm0, %v189_v41, 0.0  ;;  %v236_v34 = vmov 0.0  }
  0xbb   :  { %v60_v44 = vsel %vm47_vm0, %v191_v42, 0.0 }
  0xcb   :  { %75 = vperm.xlu1 %179, %v32_v35   ;;  %v172_v35 = vsel %vm42_vm3, 1.0, %v236_v34 }
  0xcf   :  { %78 = vperm.xlu0 %178, %v33_v36  }
  0xee   :  { %61 = vadd.xlane.f32.xlu0 %v60_v44 }
  0xef   :  { %64 = vadd.xlane.f32.xlu1 %v63_v43 }
 0x141   :  { %v139_v45 = vpop.xlane.xlu1 %138 }
 0x142   :  { %v113_v46 = vpop.xlane.xlu0 %112  ;;  %192 = vlog2.f32 %v139_v45 }
 0x143   :  { %194 = vlog2.f32 %v113_v46 }
 0x144   :  { %196 = vrcp.f32 %v113_v46 }
 0x146   :  { %v110_v47 = vpop.xlane.xlu0 %109 }
 0x147   :  { %v136_v48 = vpop.xlane.xlu1 %135  ;;  %198 = vlog2.f32 %v110_v47 }
 0x148   :  { %200 = vlog2.f32 %v136_v48 }
 0x149   :  { %202 = vrcp.f32 %v110_v47 }
 0x14b   :  { %v76_v50 = vpop.permute.xlu1 %75 }
 0x14c   :  { %v193_v52 = vpop.eup %192  ;;  %vm80_vm1 = vcmp.eq.s32.totalorder %v73_v51, %v76_v50 }
 0x14d   :  { %v143_v53 = vmul.f32 0.6931472, %v193_v52  ;;  %v195_v54 = vpop.eup %194  ;;  %v82_v60 = vsel %vm80_vm1, %v274_v2, 0.0 }
 0x14e   :  { %v79_v55 = vpop.permute.xlu0 %78  ;;  %v123_v56 = vmul.f32 0.6931472, %v195_v54  ;;  %v197_v58 = vpop.eup %196  ;;  %v84_v4 = vsel %vm47_vm0, %v82_v60, 0.0 }
 0x14f   :  { %v145_v57 = vsub.f32 %v289_v15, %v143_v53  ;;  %vm81_vm2 = vcmp.eq.s32.totalorder %v73_v51, %v79_v55  ;;  %v119_v5 = vmul.f32 %v197_v58, %v183_v28 }
 0x150   :  { %v83_v59 = vsel %vm81_vm2, %v269_v0, 0.0  ;;  %v125_v62 = vsub.f32 %v291_v16, %v123_v56 }
 0x151   :  { %v87_v61 = vsel %vm47_vm0, %v83_v59, 0.0  ;;  %v199_v63 = vpop.eup %198 }
 0x152   :  { %88 = vadd.xlane.f32.xlu1 %v87_v61  ;;  %v201_v1 = vpop.eup %200  ;;  %v121_v3 = vmul.f32 0.6931472, %v199_v63  ;;  %v147_v6 = vsub.f32 %v125_v62, %v145_v57 }
 0x153   :  { %v141_v7 = vmul.f32 0.6931472, %v201_v1  ;;  %v203_v8 = vpop.eup %202 }
 0x154   :  { %v149_v9 = vmul.f32 %v147_v6, %v119_v5  ;;  %v124_v10 = vsub.f32 %v299_v23, %v121_v3  ;;  %v118_v2 = vmul.f32 %v203_v8, %v185_v31 }
 0x155   :  { %v144_v0 = vsub.f32 %v301_v24, %v141_v7 }
 0x156   :  { %85 = vadd.xlane.f32.xlu1 %v84_v4  ;;  %v153_v13 = vsel %vm47_vm0, %v149_v9, 0.0 }
 0x157   :  { %v146_v11 = vsub.f32 %v124_v10, %v144_v0 }
 0x159   :  { %v148_v14 = vmul.f32 %v146_v11, %v118_v2 }
 0x15a   :  { %154 = vadd.xlane.f32.xlu1 %v153_v13 }
 0x15b   :  { %v150_v15 = vsel %vm47_vm0, %v148_v14, 0.0 }
 0x15e   :  { %151 = vadd.xlane.f32.xlu1 %v150_v15 }
 0x17b   :  { %v62_v17 = vpop.xlane.xlu0 %61 }
 0x17c   :  { %v65_v16 = vpop.xlane.xlu1 %64 }
 0x17d   :  { %204 = vlog2.f32 %v65_v16 }
 0x17e   :  { %206 = vlog2.f32 %v62_v17 }
 0x187   :  { %v205_v19 = vpop.eup %204 }
 0x188   :  { %v69_v21 = vmul.f32 0.6931472, %v205_v19  ;;  %v207_v22 = vpop.eup %206 }
 0x189   :  { %v67_v24 = vmul.f32 0.6931472, %v207_v22 }
 0x18a   :  { %v71_v25 = vadd.f32 %v69_v21, %v286_v12 }
 0x18b   :  { %v70_v29 = vadd.f32 %v67_v24, %v294_v18 }
 0x1df   :  { %v89_v23 = vpop.xlane.xlu1 %88 }
 0x1e0   :  { %v91_v28 = vsub.f32 %v71_v25, %v89_v23 }
 0x1e2   :  { %v157_v31 = vmul.f32 0.5, %v91_v28 }
 0x1e3   :  { %v86_v27 = vpop.xlane.xlu1 %85 }
 0x1e4   :  { %v90_v32 = vsub.f32 %v70_v29, %v86_v27 }
 0x1e6   :  { %v156_v38 = vmul.f32 0.5, %v90_v32 }
 0x1e7   :  { %v155_v30 = vpop.xlane.xlu1 %154 }
 0x1e8   :  { %v159_v33 = vmul.f32 2.0, %v155_v30 }
 0x1ea   :  { %v161_v36 = vadd.f32 %v159_v33, %v157_v31 }
 0x1eb   :  { %v152_v37 = vpop.xlane.xlu1 %151 }
 0x1ec   :  { %v163_v39 = vmul.f32 %v172_v35, %v161_v36  ;;  %v158_v40 = vmul.f32 2.0, %v152_v37 }
 0x1ee   :  { %166 = vst.msk [vmem:[%s342_s3 + $0x8] sm:$0xff] %vm164_vm4, %v163_v39  ;;  %v160_v12 = vadd.f32 %v158_v40, %v156_v38 }
 0x1f0   :  { %165 = vst.msk [vmem:[%s342_s3] sm:$0xff] %vm164_vm4, %v160_v12 }
 0x1f1   :  { %171 = vsyncpa [#allocation3], 1 }

</bundles_post_ra>
